<compile_context>
chip_gen: v7x
topology: tpu7x:2x2x1
jax: 0.10.0
libtpu: 0.0.40
codegen_flags: <defaults>
</compile_context>

<pallas_src>
import math
import jax
import jax.numpy as jnp
from jax.experimental import pallas as pl
from jax.experimental.pallas import tpu as pltpu


def _round_up(x, m):
    return (x + m - 1) // m * m


def _gelu_tanh(x):
    # GELU with tanh approximation, matching nn.GELU(approximate='tanh')
    c = math.sqrt(2.0 / math.pi)
    return 0.5 * x * (1.0 + jnp.tanh(c * (x + 0.044715 * x * x * x)))


def _vmem_budget():
    """Per-generation VMEM limit + tile-sizing budget (bytes)."""
    cap = 64 * 1024 * 1024  # conservative fallback: v7x per-TC physical VMEM
    try:
        info = pltpu.get_tpu_info()
        cap = int(getattr(info, "vmem_capacity_bytes", cap))
    except Exception:
        pass
    # ~85% of physical, never closer than 8 MiB to the top, >= 32 MiB.
    vmem_limit = max(min(int(cap * 0.85), cap - (8 << 20)), 32 << 20)
    tile_budget = int(vmem_limit * 0.9)   # headroom for compiler-internal scratch
    return vmem_limit, tile_budget


# -------------------- kernels --------------------

def _mlp_kernel_resident(x_ref, w1_ref, b1_ref, w2_ref, b2_ref, o_ref):
    # x_ref: (tm, Cp); w1_ref: (Cp, Hp); b1_ref: (1, Hp)
    # w2_ref: (Hp, Cp); b2_ref: (1, Cp); o_ref: (tm, Cp)
    h = jnp.dot(x_ref[...], w1_ref[...], preferred_element_type=jnp.float32)
    h = _gelu_tanh(h + b1_ref[...].astype(jnp.float32))
    # dropout (p = 0.0) -> identity
    y = jnp.dot(h.astype(w2_ref.dtype), w2_ref[...],
                preferred_element_type=jnp.float32)
    y = y + b2_ref[...].astype(jnp.float32)
    # dropout (p = 0.0) -> identity
    o_ref[...] = y.astype(o_ref.dtype)


def _mlp_kernel_htiled(x_ref, w1_ref, b1_ref, w2_ref, b2_ref, o_ref, acc_ref):
    # x_ref: (tm, Cp); w1_ref: (Cp, tH); b1_ref: (1, tH)
    # w2_ref: (tH, Cp); b2_ref: (1, Cp); o_ref: (tm, Cp)
    # acc_ref: (tm, Cp) f32 accumulator, resident across the H axis
    h_idx = pl.program_id(1)

    @pl.when(h_idx == 0)
    def _():
        acc_ref[...] = jnp.zeros_like(acc_ref)

    h = jnp.dot(x_ref[...], w1_ref[...], preferred_element_type=jnp.float32)
    h = _gelu_tanh(h + b1_ref[...].astype(jnp.float32))
    # dropout (p = 0.0) -> identity
    acc_ref[...] += jnp.dot(h.astype(w2_ref.dtype), w2_ref[...],
                            preferred_element_type=jnp.float32)

    @pl.when(h_idx == pl.num_programs(1) - 1)
    def _():
        y = acc_ref[...] + b2_ref[...].astype(jnp.float32)
        # dropout (p = 0.0) -> identity
        o_ref[...] = y.astype(o_ref.dtype)


# -------------------- wrapper --------------------

def mlp_forward(x, w1, b1, w2, b2, *, compute_dtype=None, tm=256, th=512,
                force_h_tiled=False):
    """x: (B, T, C). w1: (C, 4C), b1: (4C,), w2: (4C, C), b2: (C,).
    Weights are stored (in_features, out_features): y = x @ W + b (== PyTorch's
    x @ W.T with W stored (out, in)).  Returns (B, T, C) in x's dtype.
    compute_dtype: optionally cast operands (e.g. jnp.bfloat16) before the
    kernel; accumulation stays f32."""
    B, T, C = x.shape
    H = w1.shape[1]
    assert w1.shape == (C, H) and w2.shape == (H, C)
    M = B * T
    out_dtype = x.dtype

    if compute_dtype is not None:
        x = x.astype(compute_dtype)
        w1 = w1.astype(compute_dtype)
        b1 = b1.astype(compute_dtype)
        w2 = w2.astype(compute_dtype)
        b2 = b2.astype(compute_dtype)
    in_sz = jnp.dtype(x.dtype).itemsize
    out_sz = jnp.dtype(out_dtype).itemsize

    # Lane-dense padding of the feature dims (exact: padded slots are zero).
    C_pad = _round_up(C, 128)
    H_pad = _round_up(H, 128)
    M8 = _round_up(M, 8)

    vmem_limit, tile_budget = _vmem_budget()

    def pick_tm(requested):
        t = _round_up(min(requested, M8), 8)
        # v7x has 2 TensorCores: make sure the "parallel" row axis has >= 2 tiles
        if M8 >= 16 and t >= M8:
            t = max(8, (M8 // 2) // 8 * 8)
        return t

    def resident_bytes(tm_):
        w = 2 * 2 * C_pad * H_pad * in_sz           # w1 + w2 (assume double-buffered)
        b = 2 * (H_pad + C_pad) * in_sz             # b1 + b2
        io = 2 * tm_ * C_pad * (in_sz + out_sz)     # x / out tiles, double-buffered
        interm = tm_ * (H_pad + C_pad) * 4          # f32 hidden + output intermediates
        return w + b + io + interm

    def tiled_bytes(tm_, th_):
        io = 2 * tm_ * C_pad * (in_sz + out_sz)
        w = 2 * (C_pad * th_ + th_ * C_pad) * in_sz
        b = 2 * (th_ + C_pad) * in_sz
        acc = tm_ * C_pad * 4
        hbuf = tm_ * th_ * 4
        return io + w + b + acc + hbuf

    tm_res = pick_tm(tm)
    use_resident = (not force_h_tiled) and resident_bytes(tm_res) <= tile_budget

    if use_resident:
        tm_eff = tm_res
        M_pad = _round_up(M, tm_eff)
        Hp = H_pad
        grid = (M_pad // tm_eff,)
        in_specs = [
            pl.BlockSpec((tm_eff, C_pad), lambda i: (i, 0)),   # x row tile
            pl.BlockSpec((C_pad, Hp), lambda i: (0, 0)),       # w1 (resident)
            pl.BlockSpec((1, Hp), lambda i: (0, 0)),           # b1 (resident)
            pl.BlockSpec((Hp, C_pad), lambda i: (0, 0)),       # w2 (resident)
            pl.BlockSpec((1, C_pad), lambda i: (0, 0)),        # b2 (resident)
        ]
        out_specs = pl.BlockSpec((tm_eff, C_pad), lambda i: (i, 0))
        scratch_shapes = []
        kernel = _mlp_kernel_resident
        dim_sem = ("parallel",)
        bytes_accessed = (M_pad * C_pad * (in_sz + out_sz)
                          + (2 * C_pad * Hp + Hp + C_pad) * in_sz)
    else:
        # Streamed-weights fallback: raise row tile to keep arithmetic intensity up.
        tm_eff = pick_tm(max(tm, 512))
        th_eff = _round_up(min(th, H_pad), 128)
        while tiled_bytes(tm_eff, th_eff) > tile_budget and th_eff > 128:
            th_eff = max(128, (th_eff // 2) // 128 * 128)
        while tiled_bytes(tm_eff, th_eff) > tile_budget and tm_eff > 8:
            tm_eff = max(8, (tm_eff // 2) // 8 * 8)
        M_pad = _round_up(M, tm_eff)
        Hp = _round_up(H, th_eff)
        grid = (M_pad // tm_eff, Hp // th_eff)
        in_specs = [
            pl.BlockSpec((tm_eff, C_pad), lambda i, h: (i, 0)),   # x row tile
            pl.BlockSpec((C_pad, th_eff), lambda i, h: (0, h)),   # w1 chunk
            pl.BlockSpec((1, th_eff), lambda i, h: (0, h)),       # b1 chunk
            pl.BlockSpec((th_eff, C_pad), lambda i, h: (h, 0)),   # w2 chunk
            pl.BlockSpec((1, C_pad), lambda i, h: (0, 0)),        # b2
        ]
        out_specs = pl.BlockSpec((tm_eff, C_pad), lambda i, h: (i, 0))
        scratch_shapes = [pltpu.VMEM((tm_eff, C_pad), jnp.float32)]
        kernel = _mlp_kernel_htiled
        dim_sem = ("parallel", "arbitrary")
        n_row_tiles = M_pad // tm_eff
        bytes_accessed = (M_pad * C_pad * (in_sz + out_sz)
                          + n_row_tiles * (2 * C_pad * Hp + Hp) * in_sz
                          + C_pad * in_sz)

    # Zero-pad everything (exact: gelu(0 + 0) = 0 and padded weight rows/cols are 0).
    x2 = jnp.pad(x.reshape(M, C), ((0, M_pad - M), (0, C_pad - C)))
    w1_p = jnp.pad(w1, ((0, C_pad - C), (0, Hp - H)))
    b1_p = jnp.pad(b1.reshape(1, H), ((0, 0), (0, Hp - H)))
    w2_p = jnp.pad(w2, ((0, Hp - H), (0, C_pad - C)))
    b2_p = jnp.pad(b2.reshape(1, C), ((0, 0), (0, C_pad - C)))

    cost = pl.CostEstimate(
        flops=4 * M_pad * C_pad * Hp,       # two matmuls, 2*M*C*H each
        transcendentals=M_pad * Hp,         # tanh in GELU
        bytes_accessed=int(bytes_accessed),
    )

    out2 = pl.pallas_call(
        kernel,
        out_shape=jax.ShapeDtypeStruct((M_pad, C_pad), out_dtype),
        grid_spec=pltpu.PrefetchScalarGridSpec(
            num_scalar_prefetch=0,
            grid=grid,
            in_specs=in_specs,
            out_specs=out_specs,
            scratch_shapes=scratch_shapes,
        ),
        compiler_params=pltpu.CompilerParams(
            dimension_semantics=dim_sem,
            vmem_limit_bytes=vmem_limit,
        ),
        cost_estimate=cost,
    )(x2, w1_p, b1_p, w2_p, b2_p)

    return out2[:M, :C].reshape(B, T, C)


def reference_mlp(x, w1, b1, w2, b2):
    h = jnp.einsum("btc,ch->bth", x, w1) + b1
    h = _gelu_tanh(h)
    y = jnp.einsum("bth,hc->btc", h, w2) + b2
    return y


def _make_inputs(key, B, T, C):
    H = 4 * C
    kx, kw1, kb1, kw2, kb2 = jax.random.split(key, 5)
    x = jax.random.normal(kx, (B, T, C), dtype=jnp.float32)
    bound1 = 1.0 / math.sqrt(C)
    bound2 = 1.0 / math.sqrt(H)
    w1 = jax.random.uniform(kw1, (C, H), minval=-bound1, maxval=bound1, dtype=jnp.float32)
    b1 = jax.random.uniform(kb1, (H,), minval=-bound1, maxval=bound1, dtype=jnp.float32)
    w2 = jax.random.uniform(kw2, (H, C), minval=-bound2, maxval=bound2, dtype=jnp.float32)
    b2 = jax.random.uniform(kb2, (C,), minval=-bound2, maxval=bound2, dtype=jnp.float32)
    return x, w1, b1, w2, b2


if __name__ == "__main__":
    key = jax.random.PRNGKey(0)
    k0, k1 = jax.random.split(key)

    # config: n_embd=32, dropout=0.0; batch=2, seq=8
    B, T, C = 2, 8, 32
    x, w1, b1, w2, b2 = _make_inputs(k0, B, T, C)
    ref = reference_mlp(x, w1, b1, w2, b2)

    # 1) weights-resident fast path, f32 compute
    out = jax.block_until_ready(mlp_forward(x, w1, b1, w2, b2))
    assert out.shape == (B, T, C)
    assert jnp.allclose(out, ref, atol=1e-3, rtol=1e-3), "resident f32 path mismatch"

    # 2) bf16 compute (MXU-native inference recipe), f32 accumulation
    out_bf = jax.block_until_ready(
        mlp_forward(x, w1, b1, w2, b2, compute_dtype=jnp.bfloat16))
    assert jnp.allclose(out_bf.astype(jnp.float32), ref, atol=5e-2, rtol=5e-2), \
        "bf16 path mismatch"

    # 3) H-tiled fallback path (forced), multiple row tiles and >= 2 hidden steps
    B2, T2, C2 = 2, 24, 64
    x2, w1_2, b1_2, w2_2, b2_2 = _make_inputs(k1, B2, T2, C2)
    ref2 = reference_mlp(x2, w1_2, b1_2, w2_2, b2_2)
    out_t = jax.block_until_ready(
        mlp_forward(x2, w1_2, b1_2, w2_2, b2_2, force_h_tiled=True, th=128))
    assert out_t.shape == (B2, T2, C2)
    assert jnp.allclose(out_t, ref2, atol=1e-3, rtol=1e-3), "h-tiled path mismatch"

    print("KERNEL_OK")
</pallas_src>

<mosaic_0001>
module attributes {stable_mosaic.version = 11 : i64} {
  func.func @_mlp_kernel_resident(%arg0: i32, %arg1: memref<8x128xf32, #tpu.memory_space<vmem>>, %arg2: memref<128x128xf32, #tpu.memory_space<vmem>>, %arg3: memref<1x128xf32, #tpu.memory_space<vmem>>, %arg4: memref<128x128xf32, #tpu.memory_space<vmem>>, %arg5: memref<1x128xf32, #tpu.memory_space<vmem>>, %arg6: memref<8x128xf32, #tpu.memory_space<vmem>>) attributes {dimension_semantics = [#tpu.dimension_semantics<parallel>], iteration_bounds = array<i64: 2>, scalar_prefetch = 0 : i64, scratch_operands = 0 : i64, tpu.core_type = #tpu.core_type<tc>, window_params = [{transform_indices = @transform_0, window_bounds = array<i64: 8, 128>}, {pipeline_mode = #tpu.pipeline_mode<synchronous>, transform_indices = @transform_1, window_bounds = array<i64: 128, 128>}, {pipeline_mode = #tpu.pipeline_mode<synchronous>, transform_indices = @transform_2, window_bounds = array<i64: 1, 128>}, {pipeline_mode = #tpu.pipeline_mode<synchronous>, transform_indices = @transform_3, window_bounds = array<i64: 128, 128>}, {pipeline_mode = #tpu.pipeline_mode<synchronous>, transform_indices = @transform_4, window_bounds = array<i64: 1, 128>}, {transform_indices = @transform_5, window_bounds = array<i64: 8, 128>}]} {
    %c0 = arith.constant 0 : index
    %c0_0 = arith.constant 0 : index
    %0 = vector.load %arg1[%c0, %c0_0] : memref<8x128xf32, #tpu.memory_space<vmem>>, vector<8x128xf32>
    %c0_1 = arith.constant 0 : index
    %c0_2 = arith.constant 0 : index
    %1 = vector.load %arg2[%c0_1, %c0_2] : memref<128x128xf32, #tpu.memory_space<vmem>>, vector<128x128xf32>
    %cst = arith.constant dense<0.000000e+00> : vector<8x128xf32>
    %2 = tpu.matmul %0, %1, %cst {dimension_numbers = #tpu.dot_dimension_numbers<[1], [0], [0], [1], [0, 0, 1, 1], [], []>} : vector<8x128xf32>, vector<128x128xf32>, vector<8x128xf32> -> vector<8x128xf32>
    %c0_3 = arith.constant 0 : index
    %c0_4 = arith.constant 0 : index
    %3 = vector.load %arg3[%c0_3, %c0_4] : memref<1x128xf32, #tpu.memory_space<vmem>>, vector<1x128xf32>
    %4 = vector.broadcast %3 : vector<1x128xf32> to vector<8x128xf32>
    %5 = arith.addf %2, %4 : vector<8x128xf32>
    %cst_5 = arith.constant 5.000000e-01 : f32
    %6 = vector.broadcast %cst_5 : f32 to vector<8x128xf32>
    %7 = arith.mulf %6, %5 : vector<8x128xf32>
    %cst_6 = arith.constant 4.471500e-02 : f32
    %8 = vector.broadcast %cst_6 : f32 to vector<8x128xf32>
    %9 = arith.mulf %8, %5 : vector<8x128xf32>
    %10 = arith.mulf %9, %5 : vector<8x128xf32>
    %11 = arith.mulf %10, %5 : vector<8x128xf32>
    %12 = arith.addf %5, %11 : vector<8x128xf32>
    %cst_7 = arith.constant 0.797884583 : f32
    %13 = vector.broadcast %cst_7 : f32 to vector<8x128xf32>
    %14 = arith.mulf %13, %12 : vector<8x128xf32>
    %15 = math.tanh %14 : vector<8x128xf32>
    %cst_8 = arith.constant 1.000000e+00 : f32
    %16 = vector.broadcast %cst_8 : f32 to vector<8x128xf32>
    %17 = arith.addf %16, %15 : vector<8x128xf32>
    %18 = arith.mulf %7, %17 : vector<8x128xf32>
    %c0_9 = arith.constant 0 : index
    %c0_10 = arith.constant 0 : index
    %19 = vector.load %arg4[%c0_9, %c0_10] : memref<128x128xf32, #tpu.memory_space<vmem>>, vector<128x128xf32>
    %cst_11 = arith.constant dense<0.000000e+00> : vector<8x128xf32>
    %20 = tpu.matmul %18, %19, %cst_11 {dimension_numbers = #tpu.dot_dimension_numbers<[1], [0], [0], [1], [0, 0, 1, 1], [], []>} : vector<8x128xf32>, vector<128x128xf32>, vector<8x128xf32> -> vector<8x128xf32>
    %c0_12 = arith.constant 0 : index
    %c0_13 = arith.constant 0 : index
    %21 = vector.load %arg5[%c0_12, %c0_13] : memref<1x128xf32, #tpu.memory_space<vmem>>, vector<1x128xf32>
    %22 = vector.broadcast %21 : vector<1x128xf32> to vector<8x128xf32>
    %23 = arith.addf %20, %22 : vector<8x128xf32>
    %c0_14 = arith.constant 0 : index
    %c0_15 = arith.constant 0 : index
    %24 = vector.load %arg6[%c0_14, %c0_15] : memref<8x128xf32, #tpu.memory_space<vmem>>, vector<8x128xf32>
    tpu.vector_store %arg6[%c0_14, %c0_15], %23 {strides = array<i32>} : memref<8x128xf32, #tpu.memory_space<vmem>>, vector<8x128xf32>,
    return
  }
  func.func @transform_0(%arg0: i32) -> (i32, i32) {
    %c0_i32 = arith.constant 0 : i32
    %c0_i32_0 = arith.constant 0 : i32
    return %arg0, %c0_i32 : i32, i32
  }
  func.func @transform_1(%arg0: i32) -> (i32, i32) {
    %c0_i32 = arith.constant 0 : i32
    %c0_i32_0 = arith.constant 0 : i32
    %c0_i32_1 = arith.constant 0 : i32
    return %c0_i32, %c0_i32_0 : i32, i32
  }
  func.func @transform_2(%arg0: i32) -> (i32, i32) {
    %c0_i32 = arith.constant 0 : i32
    %c0_i32_0 = arith.constant 0 : i32
    %c0_i32_1 = arith.constant 0 : i32
    return %c0_i32, %c0_i32_0 : i32, i32
  }
  func.func @transform_3(%arg0: i32) -> (i32, i32) {
    %c0_i32 = arith.constant 0 : i32
    %c0_i32_0 = arith.constant 0 : i32
    %c0_i32_1 = arith.constant 0 : i32
    return %c0_i32, %c0_i32_0 : i32, i32
  }
  func.func @transform_4(%arg0: i32) -> (i32, i32) {
    %c0_i32 = arith.constant 0 : i32
    %c0_i32_0 = arith.constant 0 : i32
    %c0_i32_1 = arith.constant 0 : i32
    return %c0_i32, %c0_i32_0 : i32, i32
  }
  func.func @transform_5(%arg0: i32) -> (i32, i32) {
    %c0_i32 = arith.constant 0 : i32
    %c0_i32_0 = arith.constant 0 : i32
    return %arg0, %c0_i32 : i32, i32
  }
}

</mosaic_0001>

<bundles_post_ra>
// kernel: tpu_custom_call.1
= control target key start
LH: loop header
LB: loop body
LE: loop exit
PB: predicated region body
PF: predicated region fallthrough
CT: control target
= control target key end

     0   :  { %10 = vsyncpa [#allocation3], 0  ;;  %s1268_s0 = inlined_call_operand.hbm [shape: f32[16,128], index: 0, kind: input, shape index: {}]   ;;  %s1269_s1 = inlined_call_operand.hbm [shape: f32[128,128], index: 1, kind: input, shape index: {}]   ;;  %s1270_s2 = inlined_call_operand.vmem [shape: f32[1,128], index: 2, kind: input, shape index: {}]   ;;  %s1271_s3 = inlined_call_operand.hbm [shape: f32[128,128], index: 3, kind: input, shape index: {}]   ;;  %s1272_s4 = inlined_call_operand.vmem [shape: f32[1,128], index: 4, kind: input, shape index: {}]   ;;  %s1273_s5 = inlined_call_operand.hbm [shape: f32[16,128], index: 5, kind: output, shape index: {}]  }
   0x1   :  { %12 = vsyncpa [#allocation3 + $0x1], 0 }
   0x2   :  { %13 = vsyncpa [#allocation6], 0 }
   0x3   :  { %14 = vsyncpa [#allocation4], 0 }
   0x4   :  { %16 = vsyncpa [#allocation4 + $0x1], 0  ;;  %s1010_s18 = smov 0   ;;  %s1012_s19 = smov 0  }
   0x5   :  { %s1014_s20 = smov 0   ;;  %s1016_s21 = smov 0  }
   0x6 LB: > { %s1031_s22 = sadd.s32 4294967295, %s969_s21   ;;  %s569_s23 = sadd.s32 4294967294, %s969_s21   ;;  %s969_s21 = sphi %s1016_s21, %s1293_s21   ;;  %s965_s20 = sphi %s1014_s20, %s1292_s20   ;;  %s961_s19 = sphi %s1012_s19, %s1291_s19   ;;  %s957_s18 = sphi %s1010_s18, %s1290_s18  }
   0x7   : > { %p42_p0 = scmp.ne.s32.totalorder %s961_s19, %s957_s18  ;;  %p1274_p1 = scmp.eq.s32.totalorder %s1031_s22, 0 }
   0x8   : > { %p156_p3 = scmp.eq.s32.totalorder %s569_s23, 1  ;;  %p570_p5 = scmp.ge.s32.totalorder %s969_s21, 1 }
   0x9   : > { %p1040_p4 = por %p1274_p1, %p42_p0  ;;  %p163_p7 = scmp.lt.s32.totalorder %s969_s21, 3 }
   0xa   : > { %p1045_p6 = por %p156_p3, %p42_p0  ;;  %s971_s27 = smov [#allocation5]  }
   0xb   : > { %s1277_s24 = scalar_select %p1040_p4, 1, 0 }
   0xc   : > { %s1278_s25 = scalar_select %p1045_p6, 1, 0 }
   0xd   : > { %p1050_p8 = pnand %p570_p5, %p163_p7  ;;  %s175_s28 = sshll.u32 %s971_s27, 4  ;;  %s1054_s28 = int_to_ptr.vmem [resolvable:$true] %s175_s28 }
   0xe   : > { %s972_s30 = smov [#allocation7]   ;;  %s813_s9 = scalar_lea.hbm %s1269_s1, 2048 }
   0xf   : > { %p751_p9 = pneg %p1050_p8  ;;  %s191_s6 = sshll.u32 %s972_s30, 4  ;;  %s1065_s6 = int_to_ptr.vmem [resolvable:$true] %s191_s6 }
  0x10   : > { %p814_p12 = scmp.ne.s32.totalorder %s1269_s1, %s813_s9  ;;  %p820_p5 = scmp.lt.u32.totalorder %s813_s9, %s1269_s1 }
  0x11   : > { %p1061_p11 = pnand %p751_p9, %p1274_p1 }
  0x13   : > { %p815_p13 = pneg %p1061_p11 }
  0x15   : > { %p816_p0 = pnand %p815_p13, %p814_p12 }
  0x17   : > { %p817_p3 = pneg %p816_p0 }
  0x19   : > { %p822_p7 = pnand %p820_p5, %p817_p3 }
  0x1b   : > { %825 = shalt.err (!%p822_p7)
}
  0x1c   : > { %s826_s14 = scalar_lea.vmem %s1054_s28, 2048  ;;  %p834_p2 = scmp.lt.s32.totalorder %s1054_s28, %s1054_s28 }
  0x1d   : > { %p827_p9 = scmp.ne.s32.totalorder %s1054_s28, %s826_s14  ;;  %p835_p12 = scmp.lt.s32.totalorder %s826_s14, %s826_s14 }
  0x1f   : > { %p829_p10 = pnand %p827_p9, %p815_p13  ;;  %p836_p0 = por %p835_p12, %p834_p2 }
  0x21   : > { %p830_p1 = pneg %p829_p10 }
  0x23   : > { %p837_p6 = pnand %p836_p0, %p830_p1 }
  0x25   : > { %840 = shalt.err (!%p837_p6)
}
  0x26   : > { %s973_s15 = smov 128   ;;  %s974_s16 = smov 8  }
  0x27   : > { %754 = dma.hbm_to_vmem [thread:$0]  (!%p1061_p11), %s1269_s1, 2048, %s1054_s28, [#allocation6], %s973_s15, %s973_s15, %s974_s16  }
  0x28   : > { %s841_s7 = scalar_lea.hbm %s1271_s3, 2048 }
  0x29   : > { %p842_p2 = scmp.ne.s32.totalorder %s1271_s3, %s841_s7  ;;  %p848_p10 = scmp.lt.u32.totalorder %s841_s7, %s1271_s3 }
  0x2b   : > { %p844_p1 = pnand %p842_p2, %p815_p13 }
  0x2d   : > { %p845_p6 = pneg %p844_p1 }
  0x2f   : > { %p850_p3 = pnand %p848_p10, %p845_p6 }
  0x31   : > { %853 = shalt.err (!%p850_p3)
}
  0x32   : > { %s854_s28 = scalar_lea.vmem %s1065_s6, 2048  ;;  %p862_p12 = scmp.lt.s32.totalorder %s1065_s6, %s1065_s6 }
  0x33   : > { %p855_p5 = scmp.ne.s32.totalorder %s1065_s6, %s854_s28  ;;  %p863_p0 = scmp.lt.s32.totalorder %s854_s28, %s854_s28 }
  0x35   : > { %p857_p7 = pnand %p855_p5, %p815_p13  ;;  %p864_p2 = por %p863_p0, %p862_p12 }
  0x37   : > { %p858_p9 = pneg %p857_p7 }
  0x39   : > { %p865_p1 = pnand %p864_p2, %p858_p9 }
  0x3b   : > { %868 = shalt.err (!%p865_p1)
}
  0x3c   : > { %757 = dma.hbm_to_vmem [thread:$0]  (!%p1061_p11), %s1271_s3, 2048, %s1065_s6, [#allocation6], %s973_s15, %s973_s15, %s974_s16  }
  0x3d   : > { %s1120_s14 = sadd.s32 1, %s969_s21   ;;  %s29_s29 = sadd.s32 1, %s965_s20 }
  0x3e   : > { %s26_s17 = ssub.s32 %s969_s21, %s1120_s14  ;;  %p36_p13 = scmp.ne.s32.totalorder %s965_s20, %s961_s19 }
  0x3f   : > { %p27_p6 = scmp.eq.s32.totalorder %s26_s17, 0  ;;  %p37_p10 = scmp.eq.s32.totalorder %s969_s21, 0 }
  0x40   : > { %p1281_p3 = scmp.eq.s32.totalorder %s1031_s22, 1  ;;  %p768_p7 = scmp.lt.s32.totalorder %s969_s21, 2 }
  0x41   : > { %s1136_s27 = scalar_select %p27_p6, %s965_s20, %s29_s29  }
  0x42   : > { %p1130_p5 = por %p1281_p3, %p36_p13  ;;  %p38_p9 = por %p37_p10, %p36_p13 }
  0x43   : > { %s208_s30 = sand.u32 1, %s965_s20   ;;  %s575_s6 = sshll.u32 %s969_s21, 7 }
  0x44   : > { %s1282_s23 = scalar_select %p1130_p5, 1, 0 }
  0x45   : > { %s574_s7 = sshll.u32 %s208_s30, 3  ;;  %s1143_s8 = scalar_lea.hbm %s1268_s0, %s575_s6 }
  0x46   : > { %s212_s9 = scalar_lea.vmem [#allocation2], %s574_s7  ;;  %p1147_p11 = pnand %p768_p7, %p38_p9 }
  0x47   : > { %s219_s10 = sshll.u32 %s212_s9, 4  ;;  %s209_s28 = scalar_lea.sflag [#allocation3], %s208_s30  ;;  %s1145_s10 = int_to_ptr.vmem [resolvable:$true] %s219_s10 }
  0x48   : > { %s869_s12 = scalar_lea.hbm %s1143_s8, 128  ;;  %p871_p0 = pneg %p1147_p11 }
  0x49   : > { %p870_p12 = scmp.ne.s32.totalorder %s1143_s8, %s869_s12  ;;  %s874_s17 = scalar_lea.hbm %s1268_s0, 256 }
  0x4a   : > { %p875_p13 = scmp.lt.u32.totalorder %s1143_s8, %s1268_s0  ;;  %p876_p6 = scmp.lt.u32.totalorder %s874_s17, %s869_s12 }
  0x4b   : > { %p872_p2 = pnand %p871_p0, %p870_p12  ;;  %p878_p3 = scmp.lt.u32.totalorder %s869_s12, %s1143_s8 }
  0x4c   : > { %p877_p10 = por %p876_p6, %p875_p13 }
  0x4d   : > { %p873_p1 = pneg %p872_p2 }
  0x4e   : > { %p879_p7 = por %p878_p3, %p877_p10 }
  0x50   : > { %p880_p9 = pnand %p879_p7, %p873_p1 }
  0x52   : > { %883 = shalt.err (!%p880_p9)
}
  0x53   : > { %s884_s30 = scalar_lea.vmem %s1145_s10, 128  ;;  %s975_s15 = smov [#allocation2]  }
  0x54   : > { %p885_p12 = scmp.ne.s32.totalorder %s1145_s10, %s884_s30  ;;  %s889_s16 = sshll.u32 %s975_s15, 4  ;;  %s890_s16 = int_to_ptr.vmem [resolvable:$false] %s889_s16 }
  0x55   : > { %s891_s9 = scalar_lea.vmem %s890_s16, 256  ;;  %p892_p4 = scmp.lt.s32.totalorder %s1145_s10, %s890_s16 }
  0x56   : > { %p887_p2 = pnand %p885_p12, %p871_p0  ;;  %p893_p13 = scmp.lt.s32.totalorder %s891_s9, %s884_s30 }
  0x58   : > { %p888_p5 = pneg %p887_p2  ;;  %p894_p6 = por %p893_p13, %p892_p4 }
  0x5a   : > { %p895_p10 = pnand %p894_p6, %p888_p5 }
  0x5c   : > { %898 = shalt.err (!%p895_p10)
}
  0x5d   : > { %761 = dma.hbm_to_vmem [thread:$0]  (!%p1147_p11), %s1143_s8, 128, %s1145_s10, %s209_s28  }
  0x5e   : > { %228 = sbr.rel (%p1050_p8) target bundleno = 606 (0x25e), region = 40  ;;  %s1179_s12 = sand.u32 (!%p1050_p8), 1, %s961_s19  }
  0x5f   : > { %s577_s13 = sshll.u32 (!%p1050_p8), %s1179_s12, 3  ;;  %s231_s29 = scalar_lea.sflag (!%p1050_p8), [#allocation3], %s1179_s12 }
  0x60   : > { %s1185_s17 = scalar_lea.vmem (!%p1050_p8), [#allocation2], %s577_s13  ;;  %p1284_p4 = scmp.ne.s32.totalorder (!%p1050_p8), %s1277_s24, 0 }
  0x65   : > { %944 = dma.done.wait (%p1284_p4), %s231_s29, 128  }
  0x66   : > { %946 = vsyncadd (%p1284_p4), %s231_s29, 4294967168  ;;  %p1285_p5 = scmp.eq.s32.totalorder %s1031_s22, 0 }
  0x68   : > { %948 = dma.done.wait (%p1285_p5), [#allocation6], 4096   ;;  %p1286_p8 = pmov %p1285_p5 }
  0x69   : > { %v976_v0 = vmov 0.0|0.0   ;;  %vm977_vm0 = vmmov 0   ;;  %v978_v1 = vmov 0.0   ;;  %v270_v2 = vld [vmem:[#allocation5] sm:$0xff]  ;;  %v271_v3 = vld [vmem:[#allocation5 + $0x8] sm:$0xff]  ;;  %v272_v4 = vld [vmem:[#allocation5 + $0x10] sm:$0xff] }
  0x6a   : > { %950 = vsyncadd (%p1286_p8), [#allocation6], 4294963200  ;;  %691 = vmatprep.subr.bf16.mxu0 %v976_v0  ;;  %653 = vmatprep.mubr.msk.f32.mxu0 %vm977_vm0, %v978_v1  ;;  %v692_v5 = vpack.c.bf16 %v271_v3, %v270_v2  ;;  %v273_v6 = vld [vmem:[#allocation5 + $0x18] sm:$0xff]  ;;  %v274_v8 = vld [vmem:[#allocation5 + $0x20] sm:$0xff]  ;;  %s584_s11 = sshll.u32 %s1031_s22, 7  ;;  %s268_s28 = scalar_lea.vmem [#allocation8], %s577_s13 }
  0x6b   : > { %715 = vmatprep.subr.bf16.mxu1 %v976_v0  ;;  %688 = vmatprep.mubr.msk.f32.mxu1 %vm977_vm0, %v978_v1  ;;  %v695_v7 = vpack.c.bf16 %v273_v6, %v272_v4  ;;  %v275_v9 = vld [vmem:[#allocation5 + $0x28] sm:$0xff]  ;;  %v372_v10 = vld [vmem:[#allocation7] sm:$0xff]  ;;  %v276_v14 = vld [vmem:[#allocation5 + $0x30] sm:$0xff]  ;;  %s480_s7 = sshll.u32 %s268_s28, 4  ;;  %s1224_s15 = scalar_lea.hbm %s1273_s5, %s584_s11  ;;  %s1226_s7 = int_to_ptr.vmem [resolvable:$true] %s480_s7 }
  0x6c   : > { %693 = vmatpush3.bf16.msra.mxu0 %v692_v5  ;;  %v373_v11 = vld [vmem:[#allocation7 + $0x8] sm:$0xff]  ;;  %v698_v12 = vpack.c.bf16 %v275_v9, %v274_v8  ;;  %v277_v15 = vld [vmem:[#allocation5 + $0x38] sm:$0xff]  ;;  %v278_v17 = vld [vmem:[#allocation5 + $0x40] sm:$0xff]  ;;  %s467_s16 = scalar_lea.sflag [#allocation4], %s1179_s12  ;;  %s899_s9 = scalar_lea.vmem %s1226_s7, 128 }
  0x6d   : > { %694 = vmatprep.subr.bf16.mxu0 %v976_v0  ;;  %v716_v13 = vpack.c.bf16 %v373_v11, %v372_v10  ;;  %v701_v16 = vpack.c.bf16 %v277_v15, %v276_v14  ;;  %v279_v18 = vld [vmem:[#allocation5 + $0x48] sm:$0xff]  ;;  %v280_v20 = vld [vmem:[#allocation5 + $0x50] sm:$0xff]  ;;  %v281_v21 = vld [vmem:[#allocation5 + $0x58] sm:$0xff]  ;;  %p900_p11 = scmp.ne.s32.totalorder %s1226_s7, %s899_s9  ;;  %p1287_p0 = scmp.ne.s32.totalorder %s1282_s23, 0 }
  0x6e   : > { %v704_v19 = vpack.c.bf16 %v279_v18, %v278_v17  ;;  %v707_v22 = vpack.c.bf16 %v281_v21, %v280_v20  ;;  %v282_v23 = vld [vmem:[#allocation5 + $0x60] sm:$0xff]  ;;  %v283_v24 = vld [vmem:[#allocation5 + $0x68] sm:$0xff]  ;;  %v284_v26 = vld [vmem:[#allocation5 + $0x70] sm:$0xff]  ;;  %s979_s22 = smov [#allocation8]  }
  0x6f   : > { %717 = vmatpush3.bf16.msra.mxu1 %v716_v13  ;;  %v710_v25 = vpack.c.bf16 %v283_v24, %v282_v23  ;;  %v285_v27 = vld [vmem:[#allocation5 + $0x78] sm:$0xff]  ;;  %v374_v30 = vld [vmem:[#allocation7 + $0x10] sm:$0xff]  ;;  %v376_v33 = vld [vmem:[#allocation7 + $0x20] sm:$0xff]  ;;  %p901_p1 = pnand %p900_p11, %p1287_p0  ;;  %s903_s13 = sshll.u32 %s979_s22, 4  ;;  %s904_s13 = int_to_ptr.vmem [resolvable:$false] %s903_s13 }
  0x70   : > { %696 = vmatpush3.bf16.msra.mxu0 %v695_v7  ;;  %718 = vmatprep.subr.bf16.mxu1 %v976_v0  ;;  %v713_v28 = vpack.c.bf16 %v285_v27, %v284_v26  ;;  %v269_v29 = vld [vmem:[%s1185_s17] sm:$0xff]  ;;  %v377_v34 = vld [vmem:[#allocation7 + $0x28] sm:$0xff]  ;;  %v380_v39 = vld [vmem:[#allocation7 + $0x40] sm:$0xff]  ;;  %s905_s29 = scalar_lea.vmem %s904_s13, 256  ;;  %p906_p7 = scmp.lt.s32.totalorder %s1226_s7, %s904_s13 }
  0x71   : > { %697 = vmatprep.subr.bf16.mxu0 %v976_v0  ;;  %v375_v31 = vld [vmem:[#allocation7 + $0x18] sm:$0xff]  ;;  %v722_v35 = vpack.c.bf16 %v377_v34, %v376_v33  ;;  %v378_v36 = vld [vmem:[#allocation7 + $0x30] sm:$0xff]  ;;  %v381_v40 = vld [vmem:[#allocation7 + $0x48] sm:$0xff]  ;;  %p902_p3 = pneg %p901_p1  ;;  %p907_p9 = scmp.lt.s32.totalorder %s905_s29, %s899_s9 }
  0x72   : > { %v719_v32 = vpack.c.bf16 %v375_v31, %v374_v30  ;;  %v379_v37 = vld [vmem:[#allocation7 + $0x38] sm:$0xff]  ;;  %v728_v41 = vpack.c.bf16 %v381_v40, %v380_v39  ;;  %v382_v42 = vld [vmem:[#allocation7 + $0x50] sm:$0xff]  ;;  %v384_v45 = vld [vmem:[#allocation7 + $0x60] sm:$0xff] }
  0x73   : > { %v725_v38 = vpack.c.bf16 %v379_v37, %v378_v36  ;;  %v383_v43 = vld [vmem:[#allocation7 + $0x58] sm:$0xff]  ;;  %v385_v46 = vld [vmem:[#allocation7 + $0x68] sm:$0xff]  ;;  %v386_v48 = vld [vmem:[#allocation7 + $0x70] sm:$0xff]  ;;  %p908_p12 = por %p907_p9, %p906_p7 }
  0x74   : > { %699 = vmatpush3.bf16.msra.mxu0 %v698_v12  ;;  %720 = vmatpush3.bf16.msra.mxu1 %v719_v32  ;;  %v731_v44 = vpack.c.bf16 %v383_v43, %v382_v42  ;;  %v734_v47 = vpack.c.bf16 %v385_v46, %v384_v45  ;;  %v387_v49 = vld [vmem:[#allocation7 + $0x78] sm:$0xff]  ;;  %v581_v51 = vld [vmem:[%s1270_s2] ss:$0 sm:$0xff] }
  0x75   : > { %700 = vmatprep.subr.bf16.mxu0 %v976_v0  ;;  %721 = vmatprep.subr.bf16.mxu1 %v976_v0  ;;  %v737_v50 = vpack.c.bf16 %v387_v49, %v386_v48  ;;  %p909_p2 = pnand %p908_p12, %p902_p3 }
  0x78   : > { %702 = vmatpush3.bf16.msra.mxu0 %v701_v16  ;;  %723 = vmatpush3.bf16.msra.mxu1 %v722_v35 }
  0x79   : > { %703 = vmatprep.subr.bf16.mxu0 %v976_v0  ;;  %724 = vmatprep.subr.bf16.mxu1 %v976_v0 }
  0x7c   : > { %705 = vmatpush3.bf16.msra.mxu0 %v704_v19  ;;  %726 = vmatpush3.bf16.msra.mxu1 %v725_v38 }
  0x7d   : > { %706 = vmatprep.subr.bf16.mxu0 %v976_v0  ;;  %727 = vmatprep.subr.bf16.mxu1 %v976_v0 }
  0x80   : > { %708 = vmatpush3.bf16.msra.mxu0 %v707_v22  ;;  %729 = vmatpush3.bf16.msra.mxu1 %v728_v41 }
  0x81   : > { %709 = vmatprep.subr.bf16.mxu0 %v976_v0  ;;  %730 = vmatprep.subr.bf16.mxu1 %v976_v0 }
  0x84   : > { %711 = vmatpush3.bf16.msra.mxu0 %v710_v25  ;;  %732 = vmatpush3.bf16.msra.mxu1 %v731_v44 }
  0x85   : > { %712 = vmatprep.subr.bf16.mxu0 %v976_v0  ;;  %733 = vmatprep.subr.bf16.mxu1 %v976_v0 }
  0x88   : > { %714 = vmatpush3.bf16.msra.mxu0 %v713_v28  ;;  %735 = vmatpush3.bf16.msra.mxu1 %v734_v47 }
  0x89   : > { %736 = vmatprep.subr.bf16.mxu1 %v976_v0  ;;  %v582_v0 = vld [vmem:[%s1272_s4] ss:$0 sm:$0xff] }
  0x8b   : > { %654 = vmatmul.mubr.f32.vlgmr.msra.gmra.mrb[0].mxu0 %v269_v29 }
  0x8c   : > { %738 = vmatpush3.bf16.msra.mxu1 %v737_v50 }
 0x15e   : > { %v359_v52 = vpop.f32.mrb[0].mxu0 }
 0x15f   : > { %v360_v53 = vadd.f32 %v581_v51, %v359_v52  ;;  %v655_v54 = vpop.f32.mrb[1].mxu0 }
 0x161   : > { %v364_v55 = vmul.f32 0.044715, %v360_v53  ;;  %v363_v61 = vmul.f32 0.5, %v360_v53 }
 0x163   : > { %v365_v56 = vmul.f32 %v364_v55, %v360_v53 }
 0x165   : > { %v366_v57 = vmul.f32 %v365_v56, %v360_v53 }
 0x167   : > { %v367_v58 = vadd.f32 %v366_v57, %v360_v53 }
 0x169   : > { %v368_v59 = vmul.f32 0.7978846, %v367_v58 }
 0x16b   : > { %811 = vtanh.f32 %v368_v59 }
 0x175   : > { %v812_v60 = vpop.eup %811 }
 0x176   : > { %v370_v62 = vadd.f32 1.0, %v812_v60 }
 0x178   : > { %v371_v63 = vmul.f32 %v370_v62, %v363_v61 }
 0x17a   : > { %689 = vmatmul.mubr.f32.vlgmr.msra.gmra.mrb[0].mxu1 %v371_v63 }
 0x24d   : > { %v461_v1 = vpop.f32.mrb[0].mxu1 }
 0x24e   : > { %v462_v2 = vadd.f32 %v582_v0, %v461_v1  ;;  %v690_v3 = vpop.f32.mrb[1].mxu1 }
 0x250   : > { %465 = vst [vmem:[%s268_s28] sm:$0xff] %v462_v2 }
 0x251   : > { %912 = shalt.err (!%p909_p2)
}
 0x252   : > { %s913_s12 = scalar_lea.hbm %s1224_s15, 128  ;;  %s917_s26 = scalar_lea.hbm %s1273_s5, 256 }
 0x253   : > { %p914_p13 = scmp.ne.s32.totalorder %s1224_s15, %s913_s12  ;;  %p918_p4 = scmp.lt.u32.totalorder %s1224_s15, %s1273_s5 }
 0x254   : > { %p919_p5 = scmp.lt.u32.totalorder %s917_s26, %s913_s12  ;;  %p921_p11 = scmp.lt.u32.totalorder %s913_s12, %s1224_s15 }
 0x255   : > { %p915_p6 = pnand %p914_p13, %p1287_p0 }
 0x256   : > { %p920_p8 = por %p919_p5, %p918_p4 }
 0x257   : > { %p916_p10 = pneg %p915_p6 }
 0x258   : > { %p922_p1 = por %p921_p11, %p920_p8 }
 0x25a   : > { %p923_p3 = pnand %p922_p1, %p916_p10 }
 0x25c   : > { %926 = shalt.err (!%p923_p3)
}
 0x25d   : > { %749 = dma.vmem_to_hbm [thread:$0]  (%p1287_p0), %s1226_s7, 128, %s1224_s15, %s467_s16  }
 0x25e PF: > { %s492_s11 = sand.u32 1, %s957_s18   ;;  %p1288_p7 = scmp.ne.s32.totalorder %s1278_s25, 0 }
 0x25f   : > { %p1289_p9 = scmp.ge.s32.totalorder %s969_s21, 2  ;;  %s493_s28 = scalar_lea.sflag [#allocation4], %s492_s11 }
 0x261   : > { %p763_p12 = pnand %p1289_p9, %p1288_p7 }
 0x263   : > { %952 = dma.done.wait (!%p763_p12), %s493_s28, 128  }
 0x264   : > { %954 = vsyncadd (!%p763_p12), %s493_s28, 4294967168  ;;  %p19_p2 = scmp.ge.s32.totalorder %s1120_s14, 4   ;;  %s1290_s18 = smov %s961_s19 }
 0x265   : > { %s1291_s19 = smov %s965_s20  ;;  %s1292_s20 = smov %s1136_s27 }
 0x266   : > { %s1293_s21 = smov %s1120_s14  ;;  %21 = sbr.rel (!%p19_p2) target bundleno = 6 (0x6), region = 93 }
 0x26d   :  { %498 = vsyncpa [#allocation3], 1 }
 0x26e   :  { %500 = vsyncpa [#allocation3 + $0x1], 1 }
 0x26f   :  { %501 = vsyncpa [#allocation6], 1 }
 0x270   :  { %502 = vsyncpa [#allocation4], 1 }
 0x271   :  { %504 = vsyncpa [#allocation4 + $0x1], 1 }

</bundles_post_ra>
